<compile_context>
chip_gen: v7x
topology: tpu7x:2x2x1
jax: 0.10.0
libtpu: 0.0.40
codegen_flags: <defaults>
</compile_context>

<pallas_src>
import functools

import jax
import jax.numpy as jnp
from jax.experimental import pallas as pl
from jax.experimental.pallas import tpu as pltpu

EPS = 1e-6
_LANE = 128
_MAX_LANE_BLOCK = 2048          # lanes per grid step along the reduction axis
_MAX_BLOCK_ROWS = 8192


def _block_powsum(x_ref, p, valid_limit=None):
    """Per-row lane-sum of clamp(x, EPS)**p for one VMEM block.

    x_ref: (block_rows, L) ref, input's native dtype.
    p: traced f32 scalar.
    valid_limit: static int or None; block lanes >= valid_limit are excluded
      (ragged last lane block). Chunks entirely past the limit are skipped
      statically; at most one chunk gets a mask.
    Returns (block_rows, 1) f32.
    """
    bm, L = x_ref.shape
    n_full, rem = divmod(L, _LANE)

    chunks = [(k * _LANE, _LANE) for k in range(n_full)]
    if rem:
        chunks.append((n_full * _LANE, rem))
    if valid_limit is not None:
        chunks = [(lo, w) for (lo, w) in chunks if lo < valid_limit]

    def piece(lo, width):
        # slice -> cast -> clamp -> log -> *p -> exp, fused per chunk.
        xc = x_ref[:, lo:lo + width]
        xf = jnp.maximum(xc.astype(jnp.float32), EPS)
        # TODO(synk): optional integer-p fast path (repeated VPU multiplies for
        # small integer p, e.g. the default p=3) to skip log/exp on v7x.
        xp = jnp.exp(p * jnp.log(xf))
        if valid_limit is not None and lo + width > valid_limit:
            lane = jax.lax.broadcasted_iota(jnp.int32, (bm, width), 1)
            xp = jnp.where(lo + lane < valid_limit, xp, 0.0)
        return xp

    full = [(lo, w) for (lo, w) in chunks if w == _LANE]
    partial = [(lo, w) for (lo, w) in chunks if w != _LANE]

    s = None
    if full:
        # Up to 4 independent 128-wide accumulators (VPU adds), then tree
        # combine and one cross-lane (XLU) reduction.
        n_acc = min(4, len(full))
        accs = [piece(*full[k]) for k in range(n_acc)]
        for k in range(n_acc, len(full)):
            a = k % n_acc
            accs[a] = accs[a] + piece(*full[k])
        while len(accs) > 1:
            nxt = [accs[i] + accs[i + 1] for i in range(0, len(accs) - 1, 2)]
            if len(accs) % 2:
                nxt.append(accs[-1])
            accs = nxt
        s = jnp.sum(accs[0], axis=-1, keepdims=True)
    for lo, w in partial:
        t = jnp.sum(piece(lo, w), axis=-1, keepdims=True)
        s = t if s is None else s + t
    return s


def _gem_kernel(p_ref, x_ref, o_ref, acc_ref, *, hw, lane_block, n_lane_blocks):
    # p_ref: (1,) f32 SMEM; x_ref: (block_rows, lane_block) VMEM (native dtype);
    # o_ref: (block_rows, 1) f32 VMEM; acc_ref: (block_rows, 1) f32 scratch.
    j = pl.program_id(1)

    @pl.when(j == 0)
    def _():
        acc_ref[...] = jnp.zeros_like(acc_ref)

    p = p_ref[0]                                   # scalar path first

    tail = hw - (n_lane_blocks - 1) * lane_block   # valid lanes in last block
    ragged = (n_lane_blocks > 1) and (tail != lane_block)

    if not ragged:
        acc_ref[...] += _block_powsum(x_ref, p)
    else:
        @pl.when(j < n_lane_blocks - 1)
        def _():
            acc_ref[...] += _block_powsum(x_ref, p)

        @pl.when(j == n_lane_blocks - 1)
        def _():
            acc_ref[...] += _block_powsum(x_ref, p, valid_limit=tail)

    @pl.when(j == n_lane_blocks - 1)
    def _():
        m = acc_ref[...] * (1.0 / hw)              # mean over true H*W extent
        o_ref[...] = jnp.exp((1.0 / p) * jnp.log(m)).astype(o_ref.dtype)


def _round_down(v, m):
    return max(m, (v // m) * m)


def _round_up(v, m):
    return ((v + m - 1) // m) * m


def _vmem_limit_bytes():
    try:
        cap = int(pltpu.get_tpu_info().vmem_capacity_bytes)
    except Exception:
        cap = 64 * 1024 * 1024                    # conservative (v7x-sized) fallback
    return min(cap // 2, 64 * 1024 * 1024)        # 64 MiB v5e/v6e, 32 MiB v7x


def _choose_blocks(rows, hw, itemsize, sub_mult):
    vmem_limit = _vmem_limit_bytes()
    per_buffer = vmem_limit // 5                  # 2x double-buffered input + temps

    if hw <= _MAX_LANE_BLOCK:
        lane_block, n_lane_blocks = hw, 1
    else:
        lane_block = _MAX_LANE_BLOCK
        n_lane_blocks = -(-hw // lane_block)

    padded_lanes = _round_up(lane_block, _LANE)   # VMEM footprint uses padded lanes
    max_rows = max(sub_mult, per_buffer // (padded_lanes * itemsize))

    if rows <= sub_mult:
        block_rows = rows                         # full dim: exempt from divisibility
    else:
        block_rows = min(rows, _MAX_BLOCK_ROWS, max_rows)
        block_rows = _round_down(block_rows, sub_mult)
        # Keep >= 2 row blocks when possible so the "parallel" axis can be
        # split across v7x's 2 TensorCores.
        if rows >= 2 * sub_mult:
            half = _round_up((rows + 1) // 2, sub_mult)
            block_rows = min(block_rows, half)

    return block_rows, lane_block, n_lane_blocks, vmem_limit


def gem_pallas(x, p, eps=EPS):
    """x: (N, C, H, W), p: (1,) float -> (N, C, 1, 1), same dtype as x."""
    assert eps == EPS, "eps is compiled into the kernel"
    N, C, H, W = x.shape
    rows, hw = N * C, H * W

    # No dtype cast and no padding here: x is streamed in its native dtype and
    # the contiguous reshape is layout-only.
    x2 = x.reshape(rows, hw)

    itemsize = jnp.dtype(x.dtype).itemsize
    sub_mult = max(8, 32 // max(1, itemsize))     # 8 f32 / 16 bf16 / 32 int8-fp8
    block_rows, lane_block, n_lane_blocks, vmem_limit = _choose_blocks(
        rows, hw, itemsize, sub_mult)

    grid = (pl.cdiv(rows, block_rows), n_lane_blocks)

    kernel = functools.partial(
        _gem_kernel, hw=hw, lane_block=lane_block, n_lane_blocks=n_lane_blocks)

    out = pl.pallas_call(
        kernel,
        out_shape=jax.ShapeDtypeStruct((rows, 1), jnp.float32),
        grid=grid,
        in_specs=[
            pl.BlockSpec(memory_space=pltpu.MemorySpace.SMEM),             # p
            pl.BlockSpec((block_rows, lane_block), lambda i, j: (i, j)),   # x
        ],
        out_specs=pl.BlockSpec((block_rows, 1), lambda i, j: (i, 0)),
        scratch_shapes=[pltpu.VMEM((block_rows, 1), jnp.float32)],
        compiler_params=pltpu.CompilerParams(
            dimension_semantics=("parallel", "arbitrary"),
            vmem_limit_bytes=vmem_limit,
        ),
        cost_estimate=pl.CostEstimate(
            flops=4 * rows * hw,
            transcendentals=2 * rows * hw + 2 * rows,
            bytes_accessed=rows * hw * itemsize + rows * 4 + 4,
        ),
    )(p.astype(jnp.float32).reshape(1), x2)

    return out.reshape(N, C, 1, 1).astype(x.dtype)


def gem_reference(x, p, eps=EPS):
    xf = x.astype(jnp.float32)
    xp = jnp.power(jnp.maximum(xf, eps), p[0])
    m = jnp.mean(xp, axis=(-2, -1), keepdims=True)
    return jnp.power(m, 1.0 / p[0]).astype(x.dtype)


if __name__ == "__main__":
    key = jax.random.PRNGKey(0)
    # Deterministic parameter init, matching nn.Parameter(torch.ones(1) * 3)
    p = jnp.ones((1,), dtype=jnp.float32) * 3.0

    # Primary check: small f32 input (single lane block, 1-D effective grid).
    N, C, H, W = 2, 4, 16, 16
    x = jax.random.uniform(key, (N, C, H, W), dtype=jnp.float32,
                           minval=-1.0, maxval=1.0)
    y = jax.block_until_ready(gem_pallas(x, p))
    y_ref = gem_reference(x, p)
    assert y.shape == (N, C, 1, 1)
    assert jnp.allclose(y, y_ref, atol=1e-5, rtol=1e-5), (y, y_ref)

    # Secondary check: H*W larger than one lane block (ragged last lane block,
    # pl.when-accumulated reduction across the "arbitrary" grid axis).
    x2 = jax.random.uniform(jax.random.PRNGKey(1), (1, 2, 48, 48),
                            dtype=jnp.float32, minval=-1.0, maxval=1.0)
    y2 = jax.block_until_ready(gem_pallas(x2, p))
    assert jnp.allclose(y2, gem_reference(x2, p), atol=1e-5, rtol=1e-5)

    # Secondary check: native bf16 streaming (no wrapper-side up-cast pass).
    x3 = jax.random.uniform(jax.random.PRNGKey(2), (2, 8, 16, 16),
                            dtype=jnp.float32, minval=0.0, maxval=1.0
                            ).astype(jnp.bfloat16)
    y3 = jax.block_until_ready(gem_pallas(x3, p))
    ref3 = gem_reference(x3, p)
    assert jnp.allclose(y3.astype(jnp.float32), ref3.astype(jnp.float32),
                        atol=2e-2, rtol=2e-2)

    print("KERNEL_OK")
</pallas_src>

<mosaic_0001>
module attributes {stable_mosaic.version = 11 : i64} {
  func.func @_gem_kernel(%arg0: i32, %arg1: i32, %arg2: memref<1xf32, #tpu.memory_space<smem>>, %arg3: memref<8x256xf32, #tpu.memory_space<vmem>>, %arg4: memref<8x1xf32, #tpu.memory_space<vmem>>, %arg5: memref<8x1xf32, #tpu.memory_space<vmem>>) attributes {dimension_semantics = [#tpu.dimension_semantics<parallel>, #tpu.dimension_semantics<arbitrary>], iteration_bounds = array<i64: 1, 1>, scalar_prefetch = 0 : i64, scratch_operands = 1 : i64, tpu.core_type = #tpu.core_type<tc>, window_params = [{transform_indices = @transform_0, window_bounds = array<i64: 1>}, {transform_indices = @transform_1, window_bounds = array<i64: 8, 256>}, {transform_indices = @transform_2, window_bounds = array<i64: 8, 1>}]} {
    %c0_i32 = arith.constant 0 : i32
    %0 = arith.cmpi eq, %arg1, %c0_i32 : i32
    %1 = arith.extui %0 : i1 to i32
    %c0_i32_0 = arith.constant 0 : i32
    %2 = arith.cmpi ne, %1, %c0_i32_0 : i32
    scf.if %2 {
      %cst_12 = arith.constant 0.000000e+00 : f32
      %27 = vector.broadcast %cst_12 : f32 to vector<8x1xf32>
      %c0_13 = arith.constant 0 : index
      %c0_14 = arith.constant 0 : index
      %28 = vector.load %arg5[%c0_13, %c0_14] : memref<8x1xf32, #tpu.memory_space<vmem>>, vector<8x1xf32>
      tpu.vector_store %arg5[%c0_13, %c0_14], %27 {strides = array<i32>} : memref<8x1xf32, #tpu.memory_space<vmem>>, vector<8x1xf32>,
    } else {
    }
    %c0 = arith.constant 0 : index
    %3 = memref.load %arg2[%c0] : memref<1xf32, #tpu.memory_space<smem>>
    %c0_1 = arith.constant 0 : index
    %c0_2 = arith.constant 0 : index
    %4 = vector.load %arg5[%c0_1, %c0_2] : memref<8x1xf32, #tpu.memory_space<vmem>>, vector<8x1xf32>
    %c0_3 = arith.constant 0 : index
    %c0_4 = arith.constant 0 : index
    %5 = vector.load %arg3[%c0_3, %c0_4] : memref<8x256xf32, #tpu.memory_space<vmem>>, vector<8x128xf32>
    %cst = arith.constant 9.99999997E-7 : f32
    %6 = vector.broadcast %cst : f32 to vector<8x128xf32>
    %7 = arith.maximumf %5, %6 : vector<8x128xf32>
    %8 = math.log %7 : vector<8x128xf32>
    %9 = vector.broadcast %3 : f32 to vector<8x128xf32>
    %10 = arith.mulf %9, %8 : vector<8x128xf32>
    %11 = math.exp %10 : vector<8x128xf32>
    %c0_5 = arith.constant 0 : index
    %c128 = arith.constant 128 : index
    %12 = vector.load %arg3[%c0_5, %c128] : memref<8x256xf32, #tpu.memory_space<vmem>>, vector<8x128xf32>
    %cst_6 = arith.constant 9.99999997E-7 : f32
    %13 = vector.broadcast %cst_6 : f32 to vector<8x128xf32>
    %14 = arith.maximumf %12, %13 : vector<8x128xf32>
    %15 = math.log %14 : vector<8x128xf32>
    %16 = vector.broadcast %3 : f32 to vector<8x128xf32>
    %17 = arith.mulf %16, %15 : vector<8x128xf32>
    %18 = math.exp %17 : vector<8x128xf32>
    %19 = arith.addf %11, %18 : vector<8x128xf32>
    %cst_7 = arith.constant dense<0.000000e+00> : vector<8xf32>
    %20 = vector.multi_reduction <add>, %19, %cst_7 [1] : vector<8x128xf32> to vector<8xf32>
    %21 = vector.shape_cast %20 : vector<8xf32> to vector<8x1xf32>
    %22 = arith.addf %4, %21 : vector<8x1xf32>
    %c0_8 = arith.constant 0 : index
    %c0_9 = arith.constant 0 : index
    %23 = vector.load %arg5[%c0_8, %c0_9] : memref<8x1xf32, #tpu.memory_space<vmem>>, vector<8x1xf32>
    tpu.vector_store %arg5[%c0_8, %c0_9], %22 {strides = array<i32>} : memref<8x1xf32, #tpu.memory_space<vmem>>, vector<8x1xf32>,
    %c0_i32_10 = arith.constant 0 : i32
    %24 = arith.cmpi eq, %arg1, %c0_i32_10 : i32
    %25 = arith.extui %24 : i1 to i32
    %c0_i32_11 = arith.constant 0 : i32
    %26 = arith.cmpi ne, %25, %c0_i32_11 : i32
    scf.if %26 {
      %c0_12 = arith.constant 0 : index
      %c0_13 = arith.constant 0 : index
      %27 = vector.load %arg5[%c0_12, %c0_13] : memref<8x1xf32, #tpu.memory_space<vmem>>, vector<8x1xf32>
      %cst_14 = arith.constant 3.906250e-03 : f32
      %28 = vector.broadcast %cst_14 : f32 to vector<8x1xf32>
      %29 = arith.mulf %27, %28 : vector<8x1xf32>
      %cst_15 = arith.constant 1.000000e+00 : f32
      %30 = arith.divf %cst_15, %3 : f32
      %31 = math.log %29 : vector<8x1xf32>
      %32 = vector.broadcast %30 : f32 to vector<8x1xf32>
      %33 = arith.mulf %32, %31 : vector<8x1xf32>
      %34 = math.exp %33 : vector<8x1xf32>
      %c0_16 = arith.constant 0 : index
      %c0_17 = arith.constant 0 : index
      %35 = vector.load %arg4[%c0_16, %c0_17] : memref<8x1xf32, #tpu.memory_space<vmem>>, vector<8x1xf32>
      tpu.vector_store %arg4[%c0_16, %c0_17], %34 {strides = array<i32>} : memref<8x1xf32, #tpu.memory_space<vmem>>, vector<8x1xf32>,
    } else {
    }
    return
  }
  func.func @transform_0(%arg0: i32, %arg1: i32) -> i32 {
    %c0_i32 = arith.constant 0 : i32
    %c0_i32_0 = arith.constant 0 : i32
    return %c0_i32 : i32
  }
  func.func @transform_1(%arg0: i32, %arg1: i32) -> (i32, i32) {
    %c0_i32 = arith.constant 0 : i32
    return %arg0, %arg1 : i32, i32
  }
  func.func @transform_2(%arg0: i32, %arg1: i32) -> (i32, i32) {
    %c0_i32 = arith.constant 0 : i32
    %c0_i32_0 = arith.constant 0 : i32
    return %arg0, %c0_i32 : i32, i32
  }
}

</mosaic_0001>

<bundles_post_ra>
// kernel: tpu_custom_call.1
= control target key start
LH: loop header
LB: loop body
LE: loop exit
PB: predicated region body
PF: predicated region fallthrough
CT: control target
= control target key end

     0   :  { %8 = vsyncpa [#allocation5], 0  ;;  %s115_s9 = smov [#allocation4]   ;;  %s153_s0 = inlined_call_operand.<no memory space> [shape: f32[1], index: 0, kind: input, shape index: {}]   ;;  %s154_s1 = inlined_call_operand.hbm [shape: f32[8,256], index: 1, kind: input, shape index: {}]   ;;  %s155_s2 = inlined_call_operand.vmem [shape: f32[8,1], index: 2, kind: output, shape index: {}]  }
   0x1   :  { %s17_s10 = sshll.u32 %s115_s9, 4  ;;  %s91_s13 = scalar_lea.hbm %s154_s1, 256  ;;  %s18_s10 = int_to_ptr.vmem [resolvable:$true] %s17_s10 }
   0x2   :  { %p92_p0 = scmp.ne.s32.totalorder %s154_s1, %s91_s13  ;;  %p95_p1 = scmp.lt.u32.totalorder %s91_s13, %s154_s1 }
   0x4   :  { %p97_p2 = pnand %p95_p1, %p92_p0 }
   0x6   :  { %100 = shalt.err (!%p97_p2)
}
   0x7   :  { %s101_s18 = scalar_lea.vmem %s18_s10, 256  ;;  %p106_p4 = scmp.lt.s32.totalorder %s18_s10, %s18_s10 }
   0x8   :  { %p102_p3 = scmp.ne.s32.totalorder %s18_s10, %s101_s18  ;;  %p107_p5 = scmp.lt.s32.totalorder %s101_s18, %s101_s18 }
   0xa   :  { %p108_p6 = por %p107_p5, %p106_p4 }
   0xc   :  { %p109_p7 = pnand %p108_p6, %p102_p3 }
   0xe   :  { %112 = shalt.err (!%p109_p7)
}
   0xf   :  { %20 = dma.hbm_to_vmem [thread:$0]  %s154_s1, 256, %s18_s10, [#allocation5]  }
  0x10   :  { %113 = dma.done.wait [#allocation5], 256  }
  0x11   :  { %114 = vsyncadd [#allocation5], 4294967040  ;;  %vm28_vm0 = vcmask 7168   ;;  %v36_v0 = vstv %s153_s0  ;;  %v116_v1 = vmov 0.0   ;;  %v32_v2 = vld [vmem:[#allocation4] sm:$0xff]  ;;  %v40_v3 = vld [vmem:[#allocation4 + $0x8] sm:$0xff] }
  0x12   :  { %29 = vst.msk [vmem:[#allocation2] sm:$0xff] %vm28_vm0, %v116_v1  ;;  %77 = vrcp.f32 %v36_v0  ;;  %v33_v4 = vmax.f32 %v32_v2, 1e-06  ;;  %v41_v5 = vmax.f32 %v40_v3, 1e-06 }
  0x14   :  { %79 = vlog2.f32 %v33_v4 }
  0x15   :  { %81 = vlog2.f32 %v41_v5 }
  0x19   :  { %v31_v18 = vld [vmem:[#allocation2] sm:$0xff] }
  0x1c   :  { %v78_v6 = vpop.eup %77 }
  0x1d   :  { %73 = vpush %v78_v6 }
  0x1e   :  { %v80_v7 = vpop.eup %79 }
  0x1f   :  { %v82_v8 = vpop.eup %81  ;;  %v35_v9 = vmul.f32 0.6931472, %v80_v7 }
  0x20   :  { %v43_v10 = vmul.f32 0.6931472, %v82_v8 }
  0x21   :  { %v37_v11 = vmul.f32 %v36_v0, %v35_v9 }
  0x22   :  { %v44_v12 = vmul.f32 %v43_v10, %v36_v0 }
  0x23   :  { %v38_v13 = vmul.f32 1.442695, %v37_v11 }
  0x24   :  { %v45_v14 = vmul.f32 1.442695, %v44_v12 }
  0x25   :  { %83 = vpow2.f32 %v38_v13 }
  0x26   :  { %85 = vpow2.f32 %v45_v14 }
  0x2f   :  { %v84_v15 = vpop.eup %83 }
  0x30   :  { %v86_v16 = vpop.eup %85 }
  0x31   :  { %v47_v17 = vadd.f32 %v86_v16, %v84_v15 }
  0x33   :  { %48 = vadd.xlane.f32.xlu0 %v47_v17 }
  0x4e   :  { %s74_s0 = spop %73 }
  0x4f   :  { %v63_v24 = vstv %s74_s0 }
  0xc0   :  { %v49_v19 = vpop.xlane.xlu0 %48 }
  0xc1   :  { %v50_v20 = vadd.f32 %v49_v19, %v31_v18 }
  0xc3   :  { %52 = vst.msk [vmem:[#allocation2] sm:$0xff] %vm28_vm0, %v50_v20 }
  0xca   :  { %v56_v21 = vld [vmem:[#allocation2] sm:$0xff] }
  0xcb   :  { %v57_v22 = vmul.f32 0.00390625, %v56_v21 }
  0xcd   :  { %87 = vlog2.f32 %v57_v22 }
  0xd7   :  { %v88_v23 = vpop.eup %87 }
  0xd8   :  { %v62_v25 = vmul.f32 0.6931472, %v88_v23 }
  0xda   :  { %v64_v26 = vmul.f32 %v63_v24, %v62_v25 }
  0xdc   :  { %v65_v27 = vmul.f32 1.442695, %v64_v26 }
  0xde   :  { %89 = vpow2.f32 %v65_v27 }
  0xe8   :  { %v90_v28 = vpop.eup %89 }
  0xe9   :  { %67 = vst.msk [vmem:[%s155_s2] sm:$0xff] %vm28_vm0, %v90_v28 }
  0xea   :  { %72 = vsyncpa [#allocation5], 1 }

</bundles_post_ra>
